<compile_context>
chip_gen: v6e
topology: v6e:2x2x1
jax: 0.10.0
libtpu: 0.0.40
codegen_flags: <defaults>
</compile_context>

<pallas_src>
import functools

import jax
import jax.numpy as jnp
from jax.experimental import pallas as pl
from jax.experimental.pallas import tpu as pltpu


def _primarycaps_pixel_kernel(x_ref, w_ref, b_ref, out_ref, *, pose_rows):
    # x_ref:   (A, TM)     channel-major pixel tile
    # w_ref:   (17B, A)    fused [pose ; activation] 1x1-conv weights
    # b_ref:   (17B, 1)    fused biases
    # out_ref: (17B, TM)   fused output tile (lane-dense last dim)
    y = jnp.dot(w_ref[...], x_ref[...], preferred_element_type=jnp.float32)
    y = y + b_ref[...].astype(jnp.float32)
    # Poses stored as-is; sigmoid only on the last B rows (static, sublane-
    # aligned slices: pose_rows = 16*B is a multiple of 8).
    out_ref[:pose_rows, :] = y[:pose_rows, :].astype(out_ref.dtype)
    out_ref[pose_rows:, :] = jax.nn.sigmoid(y[pose_rows:, :]).astype(out_ref.dtype)


def _primarycaps_batch_kernel(x_ref, w_ref, b_ref, out_ref, *, pose_rows, bn):
    # x_ref:   (bN, A, M)
    # out_ref: (bN, 17B, M)
    w = w_ref[...]
    bias = b_ref[...].astype(jnp.float32)
    for i in range(bn):  # bn is a small compile-time constant -> unrolled dots
        y = jnp.dot(w, x_ref[i], preferred_element_type=jnp.float32) + bias
        out_ref[i, :pose_rows, :] = y[:pose_rows, :].astype(out_ref.dtype)
        out_ref[i, pose_rows:, :] = jax.nn.sigmoid(y[pose_rows:, :]).astype(out_ref.dtype)


def primary_caps_forward(x_nchw, wp, bp, wa, ba, *, tile_m=2048):
    """PrimaryCaps forward (all 1x1 stride-1 convs fused into one matmul).

    x_nchw: (N, A, H, W)
    wp:     (16*B, A)  pose conv weights, capsule-major (PyTorch (out,in) layout)
    bp:     (16*B,)    pose biases
    wa:     (B, A)     activation conv weights
    ba:     (B,)       activation biases
    returns (N, 17*B, H, W) = cat([poses, sigmoid(acts)], dim=1)
    """
    N, A, H, W = x_nchw.shape
    PB = wp.shape[0]                     # 16*B
    B = wa.shape[0]
    C_out = PB + B                       # 17*B

    # Fused weight / bias (tiny arrays; negligible HBM traffic).
    w = jnp.concatenate([wp, wa], axis=0)                       # (17B, A)
    b = jnp.concatenate([bp, ba], axis=0).reshape(C_out, 1)     # (17B, 1)

    M = H * W
    x3 = x_nchw.reshape(N, A, M)         # contiguous reshape, no data movement
    itemsize = jnp.dtype(x_nchw.dtype).itemsize
    out_dtype = x_nchw.dtype
    weight_vmem = 2 * C_out * (A + 128) * itemsize   # w + lane-padded bias, x2 buf

    if M < 512:
        # -------- small spatial maps: block several images per grid step -----
        bn = max(1, min(N, 2048 // max(M, 1)))
        per_img = 2 * (A + C_out) * M * itemsize + C_out * M * 4   # dbl-buf + f32 tmp
        while bn > 1 and bn * per_img > 24 * 1024 * 1024:
            bn -= 1

        kernel = functools.partial(_primarycaps_batch_kernel, pose_rows=PB, bn=bn)
        est_vmem = bn * per_img + weight_vmem
        vmem_limit = int(min(max(32 * 1024 * 1024, 2 * est_vmem), 48 * 1024 * 1024))

        out3 = pl.pallas_call(
            kernel,
            out_shape=jax.ShapeDtypeStruct((N, C_out, M), out_dtype),
            grid_spec=pltpu.PrefetchScalarGridSpec(
                num_scalar_prefetch=0,
                grid=(pl.cdiv(N, bn),),          # ragged last batch block is masked
                in_specs=[
                    pl.BlockSpec((bn, A, M), lambda n: (n, 0, 0)),
                    pl.BlockSpec((C_out, A), lambda n: (0, 0)),
                    pl.BlockSpec((C_out, 1), lambda n: (0, 0)),
                ],
                out_specs=pl.BlockSpec((bn, C_out, M), lambda n: (n, 0, 0)),
            ),
            compiler_params=pltpu.CompilerParams(
                dimension_semantics=("parallel",),
                vmem_limit_bytes=vmem_limit),
        )(x3, w, b)
    else:
        # -------- large spatial maps: lane-dense pixel tiles ------------------
        tm = max(128, (min(tile_m, M) // 128) * 128)
        while tm > 128 and (2 * tm * (A + C_out) * itemsize
                            + tm * C_out * 4) > 24 * 1024 * 1024:
            tm -= 128

        kernel = functools.partial(_primarycaps_pixel_kernel, pose_rows=PB)
        est_vmem = (2 * tm * (A + C_out) * itemsize + tm * C_out * 4 + weight_vmem)
        vmem_limit = int(min(max(32 * 1024 * 1024, 2 * est_vmem), 48 * 1024 * 1024))

        out3 = pl.pallas_call(
            kernel,
            out_shape=jax.ShapeDtypeStruct((N, C_out, M), out_dtype),
            grid_spec=pltpu.PrefetchScalarGridSpec(
                num_scalar_prefetch=0,
                grid=(N, pl.cdiv(M, tm)),        # ragged last pixel block is masked
                in_specs=[
                    pl.BlockSpec((None, A, tm), lambda n, i: (n, 0, i)),
                    pl.BlockSpec((C_out, A), lambda n, i: (0, 0)),
                    pl.BlockSpec((C_out, 1), lambda n, i: (0, 0)),
                ],
                out_specs=pl.BlockSpec((None, C_out, tm), lambda n, i: (n, 0, i)),
            ),
            compiler_params=pltpu.CompilerParams(
                dimension_semantics=("parallel", "parallel"),
                vmem_limit_bytes=vmem_limit),
        )(x3, w, b)

    return out3.reshape(N, C_out, H, W)


def _reference(x_nchw, wp, bp, wa, ba):
    PB = wp.shape[0]
    w = jnp.concatenate([wp, wa], axis=0)
    b = jnp.concatenate([bp, ba], axis=0)
    y = jnp.einsum('oa,nahw->nohw', w, x_nchw) + b.reshape(1, -1, 1, 1)
    poses = y[:, :PB]
    acts = jax.nn.sigmoid(y[:, PB:])
    return jnp.concatenate([poses, acts], axis=1)


if __name__ == "__main__":
    # Small, module-consistent shapes: A input channels, B capsule types.
    N, A, B, H, W = 2, 8, 4, 16, 16

    key = jax.random.PRNGKey(0)
    kx, kwp, kbp, kwa, kba = jax.random.split(key, 5)

    x = jax.random.normal(kx, (N, A, H, W), dtype=jnp.float32)

    # Per-capsule 1x1 convs in PyTorch (out_ch, in_ch) layout, capsule-major
    # concatenation along the output-channel axis (matches torch.cat(dim=1)).
    wp = 0.1 * jax.random.normal(kwp, (16 * B, A), dtype=jnp.float32)
    bp = 0.1 * jax.random.normal(kbp, (16 * B,), dtype=jnp.float32)
    wa = 0.1 * jax.random.normal(kwa, (B, A), dtype=jnp.float32)
    ba = 0.1 * jax.random.normal(kba, (B,), dtype=jnp.float32)

    out = primary_caps_forward(x, wp, bp, wa, ba)
    out = jax.block_until_ready(out)

    assert out.shape == (N, 17 * B, H, W), out.shape
    ref = _reference(x, wp, bp, wa, ba)
    assert jnp.allclose(out, ref, atol=1e-5, rtol=1e-5)

    print("KERNEL_OK")
</pallas_src>

<mosaic_0001>
module attributes {stable_mosaic.version = 11 : i64} {
  func.func @_primarycaps_batch_kernel(%arg0: i32, %arg1: memref<2x8x256xf32, #tpu.memory_space<vmem>>, %arg2: memref<68x8xf32, #tpu.memory_space<vmem>>, %arg3: memref<68x1xf32, #tpu.memory_space<vmem>>, %arg4: memref<2x68x256xf32, #tpu.memory_space<vmem>>) attributes {dimension_semantics = [#tpu.dimension_semantics<parallel>], iteration_bounds = array<i64: 1>, scalar_prefetch = 0 : i64, scratch_operands = 0 : i64, tpu.core_type = #tpu.core_type<tc>, window_params = [{transform_indices = @transform_0, window_bounds = array<i64: 2, 8, 256>}, {pipeline_mode = #tpu.pipeline_mode<synchronous>, transform_indices = @transform_1, window_bounds = array<i64: 68, 8>}, {pipeline_mode = #tpu.pipeline_mode<synchronous>, transform_indices = @transform_2, window_bounds = array<i64: 68, 1>}, {transform_indices = @transform_3, window_bounds = array<i64: 2, 68, 256>}]} {
    %c0 = arith.constant 0 : index
    %c0_0 = arith.constant 0 : index
    %0 = vector.load %arg2[%c0, %c0_0] : memref<68x8xf32, #tpu.memory_space<vmem>>, vector<68x8xf32>
    %c0_1 = arith.constant 0 : index
    %c0_2 = arith.constant 0 : index
    %1 = vector.load %arg3[%c0_1, %c0_2] : memref<68x1xf32, #tpu.memory_space<vmem>>, vector<68x1xf32>
    %c0_3 = arith.constant 0 : index
    %c0_4 = arith.constant 0 : index
    %c0_5 = arith.constant 0 : index
    %2 = vector.load %arg1[%c0_3, %c0_4, %c0_5] : memref<2x8x256xf32, #tpu.memory_space<vmem>>, vector<1x8x256xf32>
    %3 = vector.shape_cast %2 : vector<1x8x256xf32> to vector<8x256xf32>
    %cst = arith.constant dense<0.000000e+00> : vector<68x256xf32>
    %4 = tpu.matmul %0, %3, %cst {dimension_numbers = #tpu.dot_dimension_numbers<[1], [0], [0], [1], [0, 0, 1, 1], [], []>} : vector<68x8xf32>, vector<8x256xf32>, vector<68x256xf32> -> vector<68x256xf32>
    %5 = vector.broadcast %1 : vector<68x1xf32> to vector<68x256xf32>
    %6 = arith.addf %4, %5 : vector<68x256xf32>
    %7 = vector.extract_strided_slice %6 {offsets = [0, 0], sizes = [64, 256], strides = [1, 1]} : vector<68x256xf32> to vector<64x256xf32>
    %c0_6 = arith.constant 0 : index
    %c0_7 = arith.constant 0 : index
    %c0_8 = arith.constant 0 : index
    %8 = vector.load %arg4[%c0_6, %c0_7, %c0_8] : memref<2x68x256xf32, #tpu.memory_space<vmem>>, vector<1x64x256xf32>
    %9 = vector.shape_cast %8 : vector<1x64x256xf32> to vector<64x256xf32>
    %10 = vector.shape_cast %7 : vector<64x256xf32> to vector<1x64x256xf32>
    tpu.vector_store %arg4[%c0_6, %c0_7, %c0_8], %10 {strides = array<i32>} : memref<2x68x256xf32, #tpu.memory_space<vmem>>, vector<1x64x256xf32>,
    %11 = vector.extract_strided_slice %6 {offsets = [64, 0], sizes = [4, 256], strides = [1, 1]} : vector<68x256xf32> to vector<4x256xf32>
    %12 = arith.negf %11 : vector<4x256xf32>
    %13 = math.exp %12 : vector<4x256xf32>
    %cst_9 = arith.constant 1.000000e+00 : f32
    %14 = vector.broadcast %cst_9 : f32 to vector<4x256xf32>
    %15 = arith.addf %14, %13 : vector<4x256xf32>
    %16 = arith.divf %14, %15 : vector<4x256xf32>
    %c0_10 = arith.constant 0 : index
    %c64 = arith.constant 64 : index
    %c0_11 = arith.constant 0 : index
    %17 = vector.load %arg4[%c0_10, %c64, %c0_11] : memref<2x68x256xf32, #tpu.memory_space<vmem>>, vector<1x4x256xf32>
    %18 = vector.shape_cast %17 : vector<1x4x256xf32> to vector<4x256xf32>
    %19 = vector.shape_cast %16 : vector<4x256xf32> to vector<1x4x256xf32>
    tpu.vector_store %arg4[%c0_10, %c64, %c0_11], %19 {strides = array<i32>} : memref<2x68x256xf32, #tpu.memory_space<vmem>>, vector<1x4x256xf32>,
    %c1 = arith.constant 1 : index
    %c0_12 = arith.constant 0 : index
    %c0_13 = arith.constant 0 : index
    %20 = vector.load %arg1[%c1, %c0_12, %c0_13] : memref<2x8x256xf32, #tpu.memory_space<vmem>>, vector<1x8x256xf32>
    %21 = vector.shape_cast %20 : vector<1x8x256xf32> to vector<8x256xf32>
    %cst_14 = arith.constant dense<0.000000e+00> : vector<68x256xf32>
    %22 = tpu.matmul %0, %21, %cst_14 {dimension_numbers = #tpu.dot_dimension_numbers<[1], [0], [0], [1], [0, 0, 1, 1], [], []>} : vector<68x8xf32>, vector<8x256xf32>, vector<68x256xf32> -> vector<68x256xf32>
    %23 = vector.broadcast %1 : vector<68x1xf32> to vector<68x256xf32>
    %24 = arith.addf %22, %23 : vector<68x256xf32>
    %25 = vector.extract_strided_slice %24 {offsets = [0, 0], sizes = [64, 256], strides = [1, 1]} : vector<68x256xf32> to vector<64x256xf32>
    %c1_15 = arith.constant 1 : index
    %c0_16 = arith.constant 0 : index
    %c0_17 = arith.constant 0 : index
    %26 = vector.load %arg4[%c1_15, %c0_16, %c0_17] : memref<2x68x256xf32, #tpu.memory_space<vmem>>, vector<1x64x256xf32>
    %27 = vector.shape_cast %26 : vector<1x64x256xf32> to vector<64x256xf32>
    %28 = vector.shape_cast %25 : vector<64x256xf32> to vector<1x64x256xf32>
    tpu.vector_store %arg4[%c1_15, %c0_16, %c0_17], %28 {strides = array<i32>} : memref<2x68x256xf32, #tpu.memory_space<vmem>>, vector<1x64x256xf32>,
    %29 = vector.extract_strided_slice %24 {offsets = [64, 0], sizes = [4, 256], strides = [1, 1]} : vector<68x256xf32> to vector<4x256xf32>
    %30 = arith.negf %29 : vector<4x256xf32>
    %31 = math.exp %30 : vector<4x256xf32>
    %cst_18 = arith.constant 1.000000e+00 : f32
    %32 = vector.broadcast %cst_18 : f32 to vector<4x256xf32>
    %33 = arith.addf %32, %31 : vector<4x256xf32>
    %34 = arith.divf %32, %33 : vector<4x256xf32>
    %c1_19 = arith.constant 1 : index
    %c64_20 = arith.constant 64 : index
    %c0_21 = arith.constant 0 : index
    %35 = vector.load %arg4[%c1_19, %c64_20, %c0_21] : memref<2x68x256xf32, #tpu.memory_space<vmem>>, vector<1x4x256xf32>
    %36 = vector.shape_cast %35 : vector<1x4x256xf32> to vector<4x256xf32>
    %37 = vector.shape_cast %34 : vector<4x256xf32> to vector<1x4x256xf32>
    tpu.vector_store %arg4[%c1_19, %c64_20, %c0_21], %37 {strides = array<i32>} : memref<2x68x256xf32, #tpu.memory_space<vmem>>, vector<1x4x256xf32>,
    return
  }
  func.func @transform_0(%arg0: i32) -> (i32, i32, i32) {
    %c0_i32 = arith.constant 0 : i32
    %c0_i32_0 = arith.constant 0 : i32
    %c0_i32_1 = arith.constant 0 : i32
    return %arg0, %c0_i32, %c0_i32_0 : i32, i32, i32
  }
  func.func @transform_1(%arg0: i32) -> (i32, i32) {
    %c0_i32 = arith.constant 0 : i32
    %c0_i32_0 = arith.constant 0 : i32
    %c0_i32_1 = arith.constant 0 : i32
    return %c0_i32, %c0_i32_0 : i32, i32
  }
  func.func @transform_2(%arg0: i32) -> (i32, i32) {
    %c0_i32 = arith.constant 0 : i32
    %c0_i32_0 = arith.constant 0 : i32
    %c0_i32_1 = arith.constant 0 : i32
    return %c0_i32, %c0_i32_0 : i32, i32
  }
  func.func @transform_3(%arg0: i32) -> (i32, i32, i32) {
    %c0_i32 = arith.constant 0 : i32
    %c0_i32_0 = arith.constant 0 : i32
    %c0_i32_1 = arith.constant 0 : i32
    return %arg0, %c0_i32, %c0_i32_0 : i32, i32, i32
  }
}

</mosaic_0001>

<bundles_post_ra>
// kernel: tpu_custom_call.1
= control target key start
LH: loop header
LB: loop body
LE: loop exit
PB: predicated region body
PF: predicated region fallthrough
CT: control target
= control target key end

     0   :  { %v475_v3 = vmov 0.0   ;;  %vm79_vm0 = vcmask 64512   ;;  %v476_v8 = vmov 0   ;;  %s713_s0 = inlined_call_operand.vmem [shape: f32[2,8,256], index: 0, kind: input, shape index: {}]   ;;  %s714_s1 = inlined_call_operand.vmem [shape: f32[68,8], index: 1, kind: input, shape index: {}]   ;;  %s715_s2 = inlined_call_operand.vmem [shape: f32[68,1], index: 2, kind: input, shape index: {}]   ;;  %s716_s3 = inlined_call_operand.vmem [shape: f32[2,68,256], index: 3, kind: output, shape index: {}]  }
   0x1   :  { %v33_v0 = vld [vmem:[%s713_s0 + $0x8] sm:$0xff]  ;;  %v425_v1 = vld [vmem:[%s713_s0 + $0x18] sm:$0xff]  ;;  %v32_v2 = vld [vmem:[%s713_s0] sm:$0xff]  ;;  %171 = vmatprep.mubr.f32.mxu0 %v475_v3  ;;  %323 = vmatprep.mubr.f32.mxu1 %v475_v3 }
   0x2   :  { %137 = vmatprep.subr.mxu0 %v33_v0  ;;  %289 = vmatprep.subr.mxu1 %v425_v1  ;;  %v424_v4 = vld [vmem:[%s713_s0 + $0x10] sm:$0xff]  ;;  %v14_v5 = vld [vmem:[%s714_s1] sm:$0xff]  ;;  %v15_v6 = vld [vmem:[%s714_s1 + $0x8] sm:$0xff] }
   0x3   :  { %138 = vmatpush1.msra.mxu0 %v32_v2  ;;  %290 = vmatpush1.msra.mxu1 %v424_v4  ;;  %v31_v7 = vld [vmem:[%s715_s2 + $0x40] sm:$0xf]  ;;  %v24_v9 = vld [vmem:[%s715_s2 + $0x8] sm:$0xff]  ;;  %v25_v11 = vld [vmem:[%s715_s2 + $0x10] sm:$0xff] }
   0x4   :  { %413 = vmatmul.mubr.msk.f32.vlgmr.msra.gmra.mxu0 %vm79_vm0, %v14_v5  ;;  %426 = vmatmul.mubr.msk.f32.vlgmr.msra.gmra.mxu1 %vm79_vm0, %v14_v5  ;;  %v23_v10 = vld [vmem:[%s715_s2] sm:$0xff]  ;;  %v16_v12 = vld [vmem:[%s714_s1 + $0x10] sm:$0xff]  ;;  %v26_v13 = vld [vmem:[%s715_s2 + $0x18] sm:$0xff] }
   0x5   :  { %177 = vmatprep.mubr.f32.mxu0 %v475_v3  ;;  %329 = vmatprep.mubr.f32.mxu1 %v475_v3  ;;  %v27_v14 = vld [vmem:[%s715_s2 + $0x20] sm:$0xff]  ;;  %v17_v15 = vld [vmem:[%s714_s1 + $0x18] sm:$0xff]  ;;  %v28_v16 = vld [vmem:[%s715_s2 + $0x28] sm:$0xff] }
   0x6   :  { %457 = vset.pattern.permute.xlu0 %v476_v8  ;;  %458 = vset.pattern.permute.xlu1 %v476_v8  ;;  %v29_v17 = vld [vmem:[%s715_s2 + $0x30] sm:$0xff]  ;;  %v18_v18 = vld [vmem:[%s714_s1 + $0x20] sm:$0xff]  ;;  %v30_v19 = vld [vmem:[%s715_s2 + $0x38] sm:$0xff] }
   0x7   :  { %76 = vperm.xlu0 %457, %v31_v7   ;;  %41 = vperm.xlu1 %458, %v24_v9   ;;  %v19_v20 = vld [vmem:[%s714_s1 + $0x28] sm:$0xff]  ;;  %v20_v21 = vld [vmem:[%s714_s1 + $0x30] sm:$0xff]  ;;  %v21_v22 = vld [vmem:[%s714_s1 + $0x38] sm:$0xff] }
   0x8   :  { %414 = vmatmul.mubr.msk.f32.gmra.mxu0 %vm79_vm0, %v15_v6  ;;  %427 = vmatmul.mubr.msk.f32.gmra.mxu1 %vm79_vm0, %v15_v6  ;;  %v22_v23 = vld [vmem:[%s714_s1 + $0x40] sm:$0xf] }
   0x9   :  { %183 = vmatprep.mubr.f32.mxu0 %v475_v3  ;;  %335 = vmatprep.mubr.f32.mxu1 %v475_v3 }
   0xb   :  { %36 = vperm.xlu0 %457, %v23_v10   ;;  %46 = vperm.xlu1 %458, %v25_v11  }
   0xc   :  { %415 = vmatmul.mubr.msk.f32.gmra.mxu0 %vm79_vm0, %v16_v12  ;;  %428 = vmatmul.mubr.msk.f32.gmra.mxu1 %vm79_vm0, %v16_v12 }
   0xd   :  { %189 = vmatprep.mubr.f32.mxu0 %v475_v3  ;;  %341 = vmatprep.mubr.f32.mxu1 %v475_v3 }
   0xf   :  { %51 = vperm.xlu0 %457, %v26_v13   ;;  %56 = vperm.xlu1 %458, %v27_v14  }
  0x10   :  { %416 = vmatmul.mubr.msk.f32.gmra.mxu0 %vm79_vm0, %v17_v15  ;;  %429 = vmatmul.mubr.msk.f32.gmra.mxu1 %vm79_vm0, %v17_v15 }
  0x11   :  { %195 = vmatprep.mubr.f32.mxu0 %v475_v3  ;;  %347 = vmatprep.mubr.f32.mxu1 %v475_v3 }
  0x13   :  { %61 = vperm.xlu0 %457, %v28_v16   ;;  %66 = vperm.xlu1 %458, %v29_v17  }
  0x14   :  { %417 = vmatmul.mubr.msk.f32.gmra.mxu0 %vm79_vm0, %v18_v18  ;;  %430 = vmatmul.mubr.msk.f32.gmra.mxu1 %vm79_vm0, %v18_v18 }
  0x15   :  { %201 = vmatprep.mubr.f32.mxu0 %v475_v3  ;;  %353 = vmatprep.mubr.f32.mxu1 %v475_v3 }
  0x17   :  { %71 = vperm.xlu0 %457, %v30_v19  }
  0x18   :  { %418 = vmatmul.mubr.msk.f32.gmra.mxu0 %vm79_vm0, %v19_v20  ;;  %431 = vmatmul.mubr.msk.f32.gmra.mxu1 %vm79_vm0, %v19_v20 }
  0x19   :  { %207 = vmatprep.mubr.f32.mxu0 %v475_v3  ;;  %359 = vmatprep.mubr.f32.mxu1 %v475_v3 }
  0x1c   :  { %419 = vmatmul.mubr.msk.f32.gmra.mxu0 %vm79_vm0, %v20_v21  ;;  %432 = vmatmul.mubr.msk.f32.gmra.mxu1 %vm79_vm0, %v20_v21 }
  0x1d   :  { %213 = vmatprep.mubr.f32.mxu0 %v475_v3  ;;  %365 = vmatprep.mubr.f32.mxu1 %v475_v3 }
  0x20   :  { %420 = vmatmul.mubr.msk.f32.gmra.mxu0 %vm79_vm0, %v21_v22  ;;  %433 = vmatmul.mubr.msk.f32.gmra.mxu1 %vm79_vm0, %v21_v22 }
  0x21   :  { %219 = vmatprep.mubr.f32.mxu0 %v475_v3  ;;  %371 = vmatprep.mubr.f32.mxu1 %v475_v3 }
  0x24   :  { %421 = vmatmul.mubr.msk.f32.gmra.mxu0 %vm79_vm0, %v22_v23  ;;  %434 = vmatmul.mubr.msk.f32.gmra.mxu1 %vm79_vm0, %v22_v23 }
  0x82   :  { %v599_v24 = vpop.permute.xlu0 %76  ;;  %v42_v26 = vpop.permute.xlu1 %41 }
  0x86   :  { %v37_v25 = vpop.permute.xlu0 %36  ;;  %v47_v39 = vpop.permute.xlu1 %46 }
  0x8a   :  { %v52_v48 = vpop.permute.xlu0 %51  ;;  %v57_v57 = vpop.permute.xlu1 %56 }
  0x8e   :  { %v62_v2 = vpop.permute.xlu0 %61  ;;  %v67_v11 = vpop.permute.xlu1 %66 }
  0x92   :  { %v72_v20 = vpop.permute.xlu0 %71 }
  0xc4   :  { %v173_v27 = vpop.f32.mrf.mxu0  ;;  %v325_v28 = vpop.f32.mrf.mxu1 }
  0xc5   :  { %v174_v29 = vadd.f32 %v173_v27, %v37_v25  ;;  %v326_v30 = vadd.f32 %v325_v28, %v37_v25 }
  0xc6   :  { %v175_v31 = vpop.f32.mrf.mxu0  ;;  %v327_v32 = vpop.f32.mrf.mxu1 }
  0xc7   :  { %226 = vst [vmem:[%s716_s3] sm:$0xff] %v174_v29  ;;  %435 = vst [vmem:[%s716_s3 + $0x90] sm:$0xff] %v326_v30  ;;  %v176_v33 = vadd.f32 %v175_v31, %v37_v25  ;;  %v328_v34 = vadd.f32 %v327_v32, %v37_v25 }
  0xc8   :  { %v179_v35 = vpop.f32.mrf.mxu0  ;;  %v331_v36 = vpop.f32.mrf.mxu1 }
  0xc9   :  { %227 = vst [vmem:[%s716_s3 + $0x8] sm:$0xff] %v176_v33  ;;  %436 = vst [vmem:[%s716_s3 + $0x98] sm:$0xff] %v328_v34  ;;  %v180_v37 = vadd.f32 %v179_v35, %v42_v26  ;;  %v332_v38 = vadd.f32 %v331_v36, %v42_v26 }
  0xca   :  { %v181_v40 = vpop.f32.mrf.mxu0  ;;  %v333_v41 = vpop.f32.mrf.mxu1 }
  0xcb   :  { %228 = vst [vmem:[%s716_s3 + $0x10] sm:$0xff] %v180_v37  ;;  %437 = vst [vmem:[%s716_s3 + $0xa0] sm:$0xff] %v332_v38  ;;  %v182_v42 = vadd.f32 %v181_v40, %v42_v26  ;;  %v334_v43 = vadd.f32 %v333_v41, %v42_v26 }
  0xcc   :  { %v185_v44 = vpop.f32.mrf.mxu0  ;;  %v337_v45 = vpop.f32.mrf.mxu1 }
  0xcd   :  { %229 = vst [vmem:[%s716_s3 + $0x18] sm:$0xff] %v182_v42  ;;  %438 = vst [vmem:[%s716_s3 + $0xa8] sm:$0xff] %v334_v43  ;;  %v186_v46 = vadd.f32 %v185_v44, %v47_v39  ;;  %v338_v47 = vadd.f32 %v337_v45, %v47_v39 }
  0xce   :  { %v187_v49 = vpop.f32.mrf.mxu0  ;;  %v339_v50 = vpop.f32.mrf.mxu1 }
  0xcf   :  { %230 = vst [vmem:[%s716_s3 + $0x20] sm:$0xff] %v186_v46  ;;  %439 = vst [vmem:[%s716_s3 + $0xb0] sm:$0xff] %v338_v47  ;;  %v188_v51 = vadd.f32 %v187_v49, %v47_v39  ;;  %v340_v52 = vadd.f32 %v339_v50, %v47_v39 }
  0xd0   :  { %v191_v53 = vpop.f32.mrf.mxu0  ;;  %v343_v54 = vpop.f32.mrf.mxu1 }
  0xd1   :  { %231 = vst [vmem:[%s716_s3 + $0x28] sm:$0xff] %v188_v51  ;;  %440 = vst [vmem:[%s716_s3 + $0xb8] sm:$0xff] %v340_v52  ;;  %v192_v55 = vadd.f32 %v191_v53, %v52_v48  ;;  %v344_v56 = vadd.f32 %v343_v54, %v52_v48 }
  0xd2   :  { %v193_v58 = vpop.f32.mrf.mxu0  ;;  %v345_v59 = vpop.f32.mrf.mxu1 }
  0xd3   :  { %232 = vst [vmem:[%s716_s3 + $0x30] sm:$0xff] %v192_v55  ;;  %441 = vst [vmem:[%s716_s3 + $0xc0] sm:$0xff] %v344_v56  ;;  %v194_v60 = vadd.f32 %v193_v58, %v52_v48  ;;  %v346_v61 = vadd.f32 %v345_v59, %v52_v48 }
  0xd4   :  { %v197_v62 = vpop.f32.mrf.mxu0  ;;  %v349_v63 = vpop.f32.mrf.mxu1 }
  0xd5   :  { %233 = vst [vmem:[%s716_s3 + $0x38] sm:$0xff] %v194_v60  ;;  %442 = vst [vmem:[%s716_s3 + $0xc8] sm:$0xff] %v346_v61  ;;  %v198_v0 = vadd.f32 %v197_v62, %v57_v57  ;;  %v350_v1 = vadd.f32 %v349_v63, %v57_v57 }
  0xd6   :  { %v199_v3 = vpop.f32.mrf.mxu0  ;;  %v351_v4 = vpop.f32.mrf.mxu1 }
  0xd7   :  { %234 = vst [vmem:[%s716_s3 + $0x40] sm:$0xff] %v198_v0  ;;  %443 = vst [vmem:[%s716_s3 + $0xd0] sm:$0xff] %v350_v1  ;;  %v200_v5 = vadd.f32 %v199_v3, %v57_v57  ;;  %v352_v6 = vadd.f32 %v351_v4, %v57_v57 }
  0xd8   :  { %v203_v7 = vpop.f32.mrf.mxu0  ;;  %v355_v8 = vpop.f32.mrf.mxu1 }
  0xd9   :  { %235 = vst [vmem:[%s716_s3 + $0x48] sm:$0xff] %v200_v5  ;;  %444 = vst [vmem:[%s716_s3 + $0xd8] sm:$0xff] %v352_v6  ;;  %v204_v9 = vadd.f32 %v203_v7, %v62_v2  ;;  %v356_v10 = vadd.f32 %v355_v8, %v62_v2 }
  0xda   :  { %v205_v12 = vpop.f32.mrf.mxu0  ;;  %v357_v13 = vpop.f32.mrf.mxu1 }
  0xdb   :  { %236 = vst [vmem:[%s716_s3 + $0x50] sm:$0xff] %v204_v9  ;;  %445 = vst [vmem:[%s716_s3 + $0xe0] sm:$0xff] %v356_v10  ;;  %v206_v14 = vadd.f32 %v205_v12, %v62_v2  ;;  %v358_v15 = vadd.f32 %v357_v13, %v62_v2 }
  0xdc   :  { %v209_v16 = vpop.f32.mrf.mxu0  ;;  %v361_v17 = vpop.f32.mrf.mxu1 }
  0xdd   :  { %237 = vst [vmem:[%s716_s3 + $0x58] sm:$0xff] %v206_v14  ;;  %446 = vst [vmem:[%s716_s3 + $0xe8] sm:$0xff] %v358_v15  ;;  %v210_v18 = vadd.f32 %v209_v16, %v67_v11  ;;  %v362_v19 = vadd.f32 %v361_v17, %v67_v11 }
  0xde   :  { %v211_v21 = vpop.f32.mrf.mxu0  ;;  %v363_v22 = vpop.f32.mrf.mxu1 }
  0xdf   :  { %238 = vst [vmem:[%s716_s3 + $0x60] sm:$0xff] %v210_v18  ;;  %447 = vst [vmem:[%s716_s3 + $0xf0] sm:$0xff] %v362_v19  ;;  %v212_v23 = vadd.f32 %v211_v21, %v67_v11  ;;  %v364_v25 = vadd.f32 %v363_v22, %v67_v11 }
  0xe0   :  { %v215_v26 = vpop.f32.mrf.mxu0  ;;  %v367_v27 = vpop.f32.mrf.mxu1 }
  0xe1   :  { %239 = vst [vmem:[%s716_s3 + $0x68] sm:$0xff] %v212_v23  ;;  %448 = vst [vmem:[%s716_s3 + $0xf8] sm:$0xff] %v364_v25  ;;  %v216_v28 = vadd.f32 %v215_v26, %v72_v20  ;;  %v368_v29 = vadd.f32 %v367_v27, %v72_v20 }
  0xe2   :  { %v217_v30 = vpop.f32.mrf.mxu0  ;;  %v369_v31 = vpop.f32.mrf.mxu1 }
  0xe3   :  { %240 = vst [vmem:[%s716_s3 + $0x70] sm:$0xff] %v216_v28  ;;  %449 = vst [vmem:[%s716_s3 + $0x100] sm:$0xff] %v368_v29  ;;  %v218_v32 = vadd.f32 %v217_v30, %v72_v20  ;;  %v370_v33 = vadd.f32 %v369_v31, %v72_v20 }
  0xe4   :  { %v221_v34 = vpop.f32.mrf.mxu0  ;;  %v373_v35 = vpop.f32.mrf.mxu1 }
  0xe5   :  { %241 = vst [vmem:[%s716_s3 + $0x78] sm:$0xff] %v218_v32  ;;  %450 = vst [vmem:[%s716_s3 + $0x108] sm:$0xff] %v370_v33  ;;  %v222_v36 = vadd.f32 %v221_v34, %v599_v24  ;;  %v374_v37 = vadd.f32 %v373_v35, %v599_v24 }
  0xe6   :  { %v223_v38 = vpop.f32.mrf.mxu0  ;;  %v375_v39 = vpop.f32.mrf.mxu1 }
  0xe7   :  { %v422_v40 = vmul.f32 -1.442695, %v222_v36  ;;  %v451_v41 = vmul.f32 -1.442695, %v374_v37  ;;  %v224_v42 = vadd.f32 %v223_v38, %v599_v24  ;;  %v376_v43 = vadd.f32 %v375_v39, %v599_v24 }
  0xe9   :  { %459 = vpow2.f32 %v422_v40  ;;  %v423_v44 = vmul.f32 -1.442695, %v224_v42  ;;  %v452_v45 = vmul.f32 -1.442695, %v376_v43 }
  0xea   :  { %461 = vpow2.f32 %v451_v41 }
  0xeb   :  { %463 = vpow2.f32 %v423_v44 }
  0xec   :  { %465 = vpow2.f32 %v452_v45 }
  0xf6   :  { %v460_v46 = vpop.eup %459 }
  0xf7   :  { %v462_v47 = vpop.eup %461  ;;  %v248_v48 = vadd.f32 1.0, %v460_v46 }
  0xf8   :  { %v464_v49 = vpop.eup %463  ;;  %v401_v50 = vadd.f32 1.0, %v462_v47 }
  0xf9   :  { %v466_v51 = vpop.eup %465  ;;  %467 = vrcp.f32 %v248_v48  ;;  %v249_v52 = vadd.f32 1.0, %v464_v49 }
  0xfa   :  { %469 = vrcp.f32 %v401_v50  ;;  %v402_v53 = vadd.f32 1.0, %v466_v51 }
  0xfb   :  { %471 = vrcp.f32 %v249_v52 }
  0xfc   :  { %473 = vrcp.f32 %v402_v53 }
 0x106   :  { %v468_v54 = vpop.eup %467 }
 0x107   :  { %v470_v24 = vpop.eup %469  ;;  %254 = vst [vmem:[%s716_s3 + $0x80] sm:$0xf] %v468_v54 }
 0x108   :  { %v472_v55 = vpop.eup %471  ;;  %453 = vst [vmem:[%s716_s3 + $0x110] sm:$0xf] %v470_v24 }
 0x109   :  { %v474_v56 = vpop.eup %473  ;;  %255 = vst [vmem:[%s716_s3 + $0x88] sm:$0xf] %v472_v55 }
 0x10a   :  { %454 = vst [vmem:[%s716_s3 + $0x118] sm:$0xf] %v474_v56 }

</bundles_post_ra>
